<compile_context>
chip_gen: v7x
topology: tpu7x:2x2x1
jax: 0.10.0
libtpu: 0.0.40
codegen_flags: <defaults>
</compile_context>

<pallas_src>
import functools

import numpy as np
import jax
import jax.numpy as jnp
from jax.experimental import pallas as pl
from jax.experimental.pallas import tpu as pltpu

_LANE = 128
_SUBLANE = 8


def _round_up(x, m):
    return (x + m - 1) // m * m


def _rule_kernel(n_vars, r_pad, final_exp,
                 x_ref,       # (b_tile, K_tot)          concat(cont.flat, one-hots)
                 w_ref,       # (K_tot, n_vars*r_pad)    block-diagonal weights (resident)
                 pflat_ref,   # (1, n_vars*r_pad)        cmask*(eps-1)/eps, flattened (resident)
                 out_ref,     # (b_tile, r_pad)
                 hid_ref):    # (b_tile, n_vars*r_pad)   contrib output block OR VMEM scratch
    # One block-diagonal MXU matmul -> every variable's contribution, already in
    # the (batch, var*rule) layout contrib is stored in.
    hid_ref[...] = jnp.dot(x_ref[...], w_ref[...],
                           preferred_element_type=jnp.float32)
    hid = hid_ref[...]
    # hidden = 1 - relu(1 - h) + 1e-5  ==  min(h, 1) + 1e-5
    hclip = jnp.minimum(hid, 1.0) + 0.1 ** 5
    # hidden ** power over all variables at once: one big log + one big exp.
    # TODO(synk): exp(p*log(h)) assumes h > 0 after the clip (true for one-hot /
    # non-negative inputs); matches the reference pow on that domain.
    t = jnp.exp(pflat_ref[...] * jnp.log(hclip))
    # Sum the n_vars lane-aligned 128-wide slabs (cheap VPU adds, static unroll).
    s = t[:, 0:r_pad]
    for v in range(1, n_vars):
        s = s + t[:, v * r_pad:(v + 1) * r_pad]
    s = s - (n_vars - 1.0)
    # s ** (eps/(eps-1)); specialize the common eps==0.5 (exponent == -1) case.
    if final_exp == -1.0:
        out_ref[...] = 1.0 / s
    elif final_exp == 1.0:
        out_ref[...] = s
    else:
        out_ref[...] = jnp.exp(final_exp * jnp.log(s))
    # TODO(synk): the PyTorch isnan/isinf "rule layer error" host print is not
    # replicated in-kernel (silent NaN if s <= 0, same as the reference math).


def rule_layer_forward(params, x_continuous, x_categorical_list, epsilon,
                       category_levels, *, batch_tile=1024, compute_contrib=True):
    """Pallas implementation of RuleLayer.forward (epsilon_training=False).

    x_continuous: (B, n_continuous_variables, n_concepts)
    x_categorical_list: list of (B, level_j) arrays
    Returns (out, connection_mask, attention_masks_continuous,
             attention_masks_categorical, variable_contrib) with PyTorch shapes.
    variable_contrib is None when compute_contrib=False.
    """
    conn, att_c, att_k = params
    n_vars, n_rules = conn.shape
    n_cont = int(att_c.shape[0])
    n_concepts = int(att_c.shape[1]) if n_cont > 0 else int(x_continuous.shape[2])
    levels = [int(v) for v in category_levels]
    n_cat = len(levels)
    B = int(x_continuous.shape[0])
    eps = float(epsilon)
    # TODO(synk): epsilon_training branch (trainable epsilon) not implemented.

    # ---- batch-invariant parameter math (tiny; stays in XLA, not the kernel) ----
    cmask = (jnp.tanh(conn) + 1.0) * 0.5                            # (n_vars, R)
    amc = (jnp.tanh(att_c) + 1.0) * 0.5                             # (n_cont, C, R)
    amk = (jnp.tanh(att_k) + 1.0) * 0.5                             # (L, R)
    power = cmask * ((eps - 1.0) / eps)                             # (n_vars, R)
    final_exp = eps / (eps - 1.0)

    r_pad = _round_up(n_rules, _LANE)

    # ---- flattened input: continuous concepts then concatenated one-hots ----
    pieces = []
    if n_cont > 0:
        pieces.append(x_continuous.astype(jnp.float32).reshape(B, n_cont * n_concepts))
    if n_cat > 0:
        pieces.append(jnp.concatenate(
            [x.astype(jnp.float32) for x in x_categorical_list], axis=1))
    x_flat = pieces[0] if len(pieces) == 1 else jnp.concatenate(pieces, axis=1)
    k_tot = int(x_flat.shape[1])

    # ---- block-diagonal weight: variable v owns rows of its inputs and the
    #      128-aligned lane slab [v*r_pad, v*r_pad + n_rules) ----
    w = jnp.zeros((k_tot, n_vars * r_pad), jnp.float32)
    for v in range(n_cont):
        w = w.at[v * n_concepts:(v + 1) * n_concepts,
                 v * r_pad:v * r_pad + n_rules].set(amc[v])
    offs = np.cumsum([0] + levels)
    for j in range(n_cat):
        v = n_cont + j
        r0 = n_cont * n_concepts + int(offs[j])
        w = w.at[r0:r0 + levels[j],
                 v * r_pad:v * r_pad + n_rules].set(amk[int(offs[j]):int(offs[j + 1])])

    # Flattened power; padded lanes are 0 -> t = exp(0 * log) = 1 (finite).
    pflat = jnp.pad(power, ((0, 0), (0, r_pad - n_rules))).reshape(1, n_vars * r_pad)

    # ---- batch tiling: sublane-aligned, >=2 tiles when the batch allows (v7x) ----
    b_tile = _round_up(min(int(batch_tile), _round_up(B, _SUBLANE)), _SUBLANE)
    b_pad = _round_up(B, b_tile)
    if b_pad // b_tile == 1 and b_tile >= 2 * _SUBLANE:
        b_tile = _round_up((b_tile + 1) // 2, _SUBLANE)
        b_pad = _round_up(B, b_tile)
    n_tiles = b_pad // b_tile

    x_p = jnp.pad(x_flat, ((0, b_pad - B), (0, 0)))                 # (b_pad, K_tot)

    # ---- VMEM budget from actual block bytes (double-buffered), capped 32 MiB ----
    blk_bytes = 4 * (b_tile * k_tot + k_tot * n_vars * r_pad + n_vars * r_pad
                     + b_tile * r_pad + b_tile * n_vars * r_pad)
    vmem_limit = int(min(max(2 * blk_bytes + (2 << 20), 4 << 20), 32 << 20))

    kernel = functools.partial(_rule_kernel, n_vars, r_pad, final_exp)

    in_specs = [
        pl.BlockSpec((b_tile, k_tot), lambda i: (i, 0)),                 # x_flat
        pl.BlockSpec((k_tot, n_vars * r_pad), lambda i: (0, 0)),         # W (resident)
        pl.BlockSpec((1, n_vars * r_pad), lambda i: (0, 0)),             # power (resident)
    ]
    out_spec_main = pl.BlockSpec((b_tile, r_pad), lambda i: (i, 0))
    out_shape_main = jax.ShapeDtypeStruct((b_pad, r_pad), jnp.float32)
    cparams = pltpu.CompilerParams(dimension_semantics=("parallel",),
                                   vmem_limit_bytes=vmem_limit)

    if compute_contrib:
        out_p, contrib_p = pl.pallas_call(
            kernel,
            grid=(n_tiles,),
            in_specs=in_specs,
            out_specs=(out_spec_main,
                       pl.BlockSpec((b_tile, n_vars * r_pad), lambda i: (i, 0))),
            out_shape=(out_shape_main,
                       jax.ShapeDtypeStruct((b_pad, n_vars * r_pad), jnp.float32)),
            compiler_params=cparams,
        )(x_p, w, pflat)
        # (b_pad, n_vars*r_pad) -> (b_pad, n_vars, r_pad) is a free reshape;
        # only a small slice remains (no full-array transpose through HBM).
        variable_contrib = contrib_p.reshape(b_pad, n_vars, r_pad)[:B, :, :n_rules]
    else:
        out_p = pl.pallas_call(
            kernel,
            grid=(n_tiles,),
            in_specs=in_specs,
            out_specs=out_spec_main,
            out_shape=out_shape_main,
            scratch_shapes=[pltpu.VMEM((b_tile, n_vars * r_pad), jnp.float32)],
            compiler_params=cparams,
        )(x_p, w, pflat)
        variable_contrib = None

    out = out_p[:B, :n_rules]
    return out, cmask, amc, amk, variable_contrib


def reference_forward(params, x_continuous, x_categorical_list, epsilon,
                      category_levels):
    """Plain-JAX mirror of the PyTorch forward (for verification)."""
    conn, att_c, att_k = params
    n_vars, n_rules = conn.shape
    levels = [int(v) for v in category_levels]
    offsets = np.cumsum([0] + levels)

    cmask = (jnp.tanh(conn) + 1) / 2
    amc = (jnp.tanh(att_c) + 1) / 2
    amk = (jnp.tanh(att_k) + 1) / 2

    hidden = jnp.sum(x_continuous[..., None] * amc[None], axis=-2)  # (B,n_cont,R)
    cat_cols = []
    for i in range(n_rules):
        hc = []
        for j in range(len(levels)):
            m = amk[offsets[j]:offsets[j + 1], i]
            hc.append(x_categorical_list[j] @ m)
        cat_cols.append(jnp.stack(hc, axis=1))
    if cat_cols:
        hidden = jnp.concatenate([hidden, jnp.stack(cat_cols, axis=-1)], axis=1)
    contrib = hidden
    hidden = 1 - jax.nn.relu(1 - hidden) + 0.1 ** 5
    power = cmask[None] * (epsilon - 1) / epsilon
    temp = jnp.sum(hidden ** power, axis=1) - (n_vars - 1)
    out = temp ** (epsilon / (epsilon - 1))
    return out, cmask, amc, amk, contrib


if __name__ == "__main__":
    # Small deterministic config:
    #   category_info = [0,0,0,3,4] -> 3 continuous vars, 2 categorical (3,4 levels)
    n_concepts, n_rules = 3, 8
    category_info = np.array([0, 0, 0, 3, 4])
    n_vars = len(category_info)
    n_cont = int(np.sum(category_info == 0))
    levels = [int(v) for v in category_info[category_info > 0]]
    total_levels = int(sum(levels))
    B = 4
    epsilon = 0.5

    key = jax.random.PRNGKey(0)
    k1, k2, k3, k4, k5 = jax.random.split(key, 5)
    # reset_parameters(): uniform(-1, 0) for all three parameter tensors
    conn = jax.random.uniform(k1, (n_vars, n_rules), jnp.float32, -1.0, 0.0)
    att_c = jax.random.uniform(k2, (n_cont, n_concepts, n_rules), jnp.float32, -1.0, 0.0)
    att_k = jax.random.uniform(k3, (total_levels, n_rules), jnp.float32, -1.0, 0.0)
    params = (conn, att_c, att_k)

    x_continuous = jax.random.uniform(k4, (B, n_cont, n_concepts), jnp.float32)
    cat_keys = jax.random.split(k5, len(levels))
    x_categorical_list = [
        jax.nn.one_hot(jax.random.randint(kk, (B,), 0, lv), lv, dtype=jnp.float32)
        for kk, lv in zip(cat_keys, levels)
    ]

    refs = reference_forward(params, x_continuous, x_categorical_list,
                             epsilon, levels)

    # Full forward (with variable_contrib writeback).
    outs = rule_layer_forward(params, x_continuous, x_categorical_list,
                              epsilon, levels)
    outs = jax.block_until_ready(outs)
    for got, want in zip(outs, refs):
        np.testing.assert_allclose(np.asarray(got), np.asarray(want),
                                   rtol=2e-4, atol=1e-5)

    # Contrib-free fast path (skips ~80% of HBM writeback).
    outs2 = rule_layer_forward(params, x_continuous, x_categorical_list,
                               epsilon, levels, compute_contrib=False)
    outs2 = jax.block_until_ready(outs2)
    np.testing.assert_allclose(np.asarray(outs2[0]), np.asarray(refs[0]),
                               rtol=2e-4, atol=1e-5)
    assert outs2[4] is None

    print("KERNEL_OK")
</pallas_src>

<mosaic_0001>
module attributes {stable_mosaic.version = 11 : i64} {
  func.func @_rule_kernel(%arg0: i32, %arg1: memref<8x16xf32, #tpu.memory_space<vmem>>, %arg2: memref<16x640xf32, #tpu.memory_space<vmem>>, %arg3: memref<1x640xf32, #tpu.memory_space<vmem>>, %arg4: memref<8x128xf32, #tpu.memory_space<vmem>>, %arg5: memref<8x640xf32, #tpu.memory_space<vmem>>) attributes {dimension_semantics = [#tpu.dimension_semantics<parallel>], iteration_bounds = array<i64: 1>, scalar_prefetch = 0 : i64, scratch_operands = 0 : i64, tpu.core_type = #tpu.core_type<tc>, window_params = [{transform_indices = @transform_0, window_bounds = array<i64: 8, 16>}, {pipeline_mode = #tpu.pipeline_mode<synchronous>, transform_indices = @transform_1, window_bounds = array<i64: 16, 640>}, {pipeline_mode = #tpu.pipeline_mode<synchronous>, transform_indices = @transform_2, window_bounds = array<i64: 1, 640>}, {transform_indices = @transform_3, window_bounds = array<i64: 8, 128>}, {transform_indices = @transform_4, window_bounds = array<i64: 8, 640>}]} {
    %c0 = arith.constant 0 : index
    %c0_0 = arith.constant 0 : index
    %0 = vector.load %arg1[%c0, %c0_0] : memref<8x16xf32, #tpu.memory_space<vmem>>, vector<8x16xf32>
    %c0_1 = arith.constant 0 : index
    %c0_2 = arith.constant 0 : index
    %1 = vector.load %arg2[%c0_1, %c0_2] : memref<16x640xf32, #tpu.memory_space<vmem>>, vector<16x640xf32>
    %cst = arith.constant dense<0.000000e+00> : vector<8x640xf32>
    %2 = tpu.matmul %0, %1, %cst {dimension_numbers = #tpu.dot_dimension_numbers<[1], [0], [0], [1], [0, 0, 1, 1], [], []>} : vector<8x16xf32>, vector<16x640xf32>, vector<8x640xf32> -> vector<8x640xf32>
    %c0_3 = arith.constant 0 : index
    %c0_4 = arith.constant 0 : index
    %3 = vector.load %arg5[%c0_3, %c0_4] : memref<8x640xf32, #tpu.memory_space<vmem>>, vector<8x640xf32>
    tpu.vector_store %arg5[%c0_3, %c0_4], %2 {strides = array<i32>} : memref<8x640xf32, #tpu.memory_space<vmem>>, vector<8x640xf32>,
    %c0_5 = arith.constant 0 : index
    %c0_6 = arith.constant 0 : index
    %4 = vector.load %arg5[%c0_5, %c0_6] : memref<8x640xf32, #tpu.memory_space<vmem>>, vector<8x640xf32>
    %cst_7 = arith.constant 1.000000e+00 : f32
    %5 = vector.broadcast %cst_7 : f32 to vector<8x640xf32>
    %6 = arith.minimumf %4, %5 : vector<8x640xf32>
    %cst_8 = arith.constant 9.99999974E-6 : f32
    %7 = vector.broadcast %cst_8 : f32 to vector<8x640xf32>
    %8 = arith.addf %6, %7 : vector<8x640xf32>
    %c0_9 = arith.constant 0 : index
    %c0_10 = arith.constant 0 : index
    %9 = vector.load %arg3[%c0_9, %c0_10] : memref<1x640xf32, #tpu.memory_space<vmem>>, vector<1x640xf32>
    %10 = math.log %8 : vector<8x640xf32>
    %11 = vector.broadcast %9 : vector<1x640xf32> to vector<8x640xf32>
    %12 = arith.mulf %11, %10 : vector<8x640xf32>
    %13 = math.exp %12 : vector<8x640xf32>
    %14 = vector.extract_strided_slice %13 {offsets = [0, 0], sizes = [8, 128], strides = [1, 1]} : vector<8x640xf32> to vector<8x128xf32>
    %15 = vector.extract_strided_slice %13 {offsets = [0, 128], sizes = [8, 128], strides = [1, 1]} : vector<8x640xf32> to vector<8x128xf32>
    %16 = arith.addf %14, %15 : vector<8x128xf32>
    %17 = vector.extract_strided_slice %13 {offsets = [0, 256], sizes = [8, 128], strides = [1, 1]} : vector<8x640xf32> to vector<8x128xf32>
    %18 = arith.addf %16, %17 : vector<8x128xf32>
    %19 = vector.extract_strided_slice %13 {offsets = [0, 384], sizes = [8, 128], strides = [1, 1]} : vector<8x640xf32> to vector<8x128xf32>
    %20 = arith.addf %18, %19 : vector<8x128xf32>
    %21 = vector.extract_strided_slice %13 {offsets = [0, 512], sizes = [8, 128], strides = [1, 1]} : vector<8x640xf32> to vector<8x128xf32>
    %22 = arith.addf %20, %21 : vector<8x128xf32>
    %cst_11 = arith.constant 4.000000e+00 : f32
    %23 = vector.broadcast %cst_11 : f32 to vector<8x128xf32>
    %24 = arith.subf %22, %23 : vector<8x128xf32>
    %cst_12 = arith.constant 1.000000e+00 : f32
    %25 = vector.broadcast %cst_12 : f32 to vector<8x128xf32>
    %26 = arith.divf %25, %24 : vector<8x128xf32>
    %c0_13 = arith.constant 0 : index
    %c0_14 = arith.constant 0 : index
    %27 = vector.load %arg4[%c0_13, %c0_14] : memref<8x128xf32, #tpu.memory_space<vmem>>, vector<8x128xf32>
    tpu.vector_store %arg4[%c0_13, %c0_14], %26 {strides = array<i32>} : memref<8x128xf32, #tpu.memory_space<vmem>>, vector<8x128xf32>,
    return
  }
  func.func @transform_0(%arg0: i32) -> (i32, i32) {
    %c0_i32 = arith.constant 0 : i32
    %c0_i32_0 = arith.constant 0 : i32
    return %arg0, %c0_i32 : i32, i32
  }
  func.func @transform_1(%arg0: i32) -> (i32, i32) {
    %c0_i32 = arith.constant 0 : i32
    %c0_i32_0 = arith.constant 0 : i32
    %c0_i32_1 = arith.constant 0 : i32
    return %c0_i32, %c0_i32_0 : i32, i32
  }
  func.func @transform_2(%arg0: i32) -> (i32, i32) {
    %c0_i32 = arith.constant 0 : i32
    %c0_i32_0 = arith.constant 0 : i32
    %c0_i32_1 = arith.constant 0 : i32
    return %c0_i32, %c0_i32_0 : i32, i32
  }
  func.func @transform_3(%arg0: i32) -> (i32, i32) {
    %c0_i32 = arith.constant 0 : i32
    %c0_i32_0 = arith.constant 0 : i32
    return %arg0, %c0_i32 : i32, i32
  }
  func.func @transform_4(%arg0: i32) -> (i32, i32) {
    %c0_i32 = arith.constant 0 : i32
    %c0_i32_0 = arith.constant 0 : i32
    return %arg0, %c0_i32 : i32, i32
  }
}

</mosaic_0001>

<bundles_post_ra>
// kernel: tpu_custom_call.1
= control target key start
LH: loop header
LB: loop body
LE: loop exit
PB: predicated region body
PF: predicated region fallthrough
CT: control target
= control target key end

     0   :  { %10 = vsyncpa [#allocation3], 0  ;;  %s625_s0 = inlined_call_operand.hbm [shape: f32[8,16], index: 0, kind: input, shape index: {}]   ;;  %s626_s1 = inlined_call_operand.hbm [shape: f32[16,640], index: 1, kind: input, shape index: {}]   ;;  %s627_s2 = inlined_call_operand.vmem [shape: f32[1,640], index: 2, kind: input, shape index: {}]   ;;  %s628_s3 = inlined_call_operand.hbm [shape: f32[8,128], index: 3, kind: output, shape index: {0}]   ;;  %s629_s4 = inlined_call_operand.hbm [shape: f32[8,640], index: 4, kind: output, shape index: {1}]  }
   0x1   :  { %11 = vsyncpa [#allocation6], 0 }
   0x2   :  { %12 = vsyncpa [#allocation4], 0 }
   0x3   :  { %13 = vsyncpa [#allocation9], 0  ;;  %s533_s15 = smov [#allocation2]   ;;  %s534_s17 = smov [#allocation5]  }
   0x4   :  { %s20_s16 = sshll.u32 %s533_s15, 4  ;;  %s29_s18 = sshll.u32 %s534_s17, 4  ;;  %s21_s16 = int_to_ptr.vmem [resolvable:$true] %s20_s16  ;;  %s567_s18 = int_to_ptr.vmem [resolvable:$true] %s29_s18 }
   0x5   :  { %s437_s21 = scalar_lea.hbm %s625_s0, 128 }
   0x6   :  { %p438_p0 = scmp.ne.s32.totalorder %s625_s0, %s437_s21  ;;  %p441_p1 = scmp.lt.u32.totalorder %s437_s21, %s625_s0 }
   0x8   :  { %p443_p2 = pnand %p441_p1, %p438_p0 }
   0xa   :  { %446 = shalt.err (!%p443_p2)
}
   0xb   :  { %s447_s26 = scalar_lea.vmem %s21_s16, 128  ;;  %p452_p4 = scmp.lt.s32.totalorder %s21_s16, %s21_s16 }
   0xc   :  { %p448_p3 = scmp.ne.s32.totalorder %s21_s16, %s447_s26  ;;  %p453_p5 = scmp.lt.s32.totalorder %s447_s26, %s447_s26 }
   0xe   :  { %p454_p6 = por %p453_p5, %p452_p4 }
  0x10   :  { %p455_p7 = pnand %p454_p6, %p448_p3 }
  0x12   :  { %458 = shalt.err (!%p455_p7)
}
  0x13   :  { %23 = dma.hbm_to_vmem [thread:$0]  %s625_s0, 128, %s21_s16, [#allocation3]  }
  0x14   :  { %s459_s5 = scalar_lea.hbm %s626_s1, 1280 }
  0x15   :  { %p460_p8 = scmp.ne.s32.totalorder %s626_s1, %s459_s5  ;;  %p463_p9 = scmp.lt.u32.totalorder %s459_s5, %s626_s1 }
  0x17   :  { %p465_p10 = pnand %p463_p9, %p460_p8 }
  0x19   :  { %468 = shalt.err (!%p465_p10)
}
  0x1a   :  { %s469_s10 = scalar_lea.vmem %s567_s18, 1280  ;;  %p474_p12 = scmp.lt.s32.totalorder %s567_s18, %s567_s18 }
  0x1b   :  { %p470_p11 = scmp.ne.s32.totalorder %s567_s18, %s469_s10  ;;  %p475_p13 = scmp.lt.s32.totalorder %s469_s10, %s469_s10 }
  0x1d   :  { %p476_p0 = por %p475_p13, %p474_p12 }
  0x1f   :  { %p477_p1 = pnand %p476_p0, %p470_p11 }
  0x21   :  { %480 = shalt.err (!%p477_p1)
}
  0x22   :  { %s535_s0 = smov 640   ;;  %s536_s11 = smov 40  }
  0x23   :  { %35 = dma.hbm_to_vmem [thread:$0]  %s626_s1, 1280, %s567_s18, [#allocation6], %s535_s0, %s535_s0, %s536_s11  }
  0x24   :  { %525 = dma.done.wait [#allocation3], 128  }
  0x25   :  { %526 = vsyncadd [#allocation3], 4294967168 }
  0x26   :  { %527 = dma.done.wait [#allocation6], 1280  }
  0x27   :  { %528 = vsyncadd [#allocation6], 4294966016  ;;  %v537_v0 = vmov 0.0   ;;  %v46_v1 = vld [vmem:[#allocation5 + $0x8] sm:$0xff]  ;;  %v51_v2 = vld [vmem:[#allocation5 + $0x30] sm:$0xff]  ;;  %vm55_vm0 = vcmask 130048   ;;  %v303_v25 = vlaneseq }
  0x28   :  { %123 = vmatprep.mubr.f32.mxu0 %v537_v0  ;;  %194 = vmatprep.mubr.f32.mxu1 %v537_v0  ;;  %v45_v3 = vld [vmem:[#allocation5] sm:$0xff]  ;;  %v395_v4 = vpack.c.bf16 %v51_v2, %v46_v1  ;;  %v50_v5 = vld [vmem:[#allocation5 + $0x28] sm:$0xff]  ;;  %v48_v6 = vld [vmem:[#allocation5 + $0x18] sm:$0xff]  ;;  %v538_v17 = vmov 0.0|0.0   ;;  %vm539_vm1 = vmmov 0   ;;  %s540_s1 = smov [#allocation8]  }
  0x29   :  { %v53_v7 = vld [vmem:[#allocation5 + $0x40] sm:$0xff]  ;;  %v397_v8 = vpack.c.bf16 %v50_v5, %v45_v3  ;;  %v47_v10 = vld [vmem:[#allocation5 + $0x10] sm:$0xff]  ;;  %v52_v11 = vld [vmem:[#allocation5 + $0x38] sm:$0xff]  ;;  %s367_s14 = sshll.u32 %s540_s1, 4  ;;  %v304_v34 = vshrl.u32 %v303_v25, 7  ;;  %s368_s14 = int_to_ptr.vmem [resolvable:$true] %s367_s14 }
  0x2a   :  { %v399_v9 = vpack.c.bf16 %v53_v7, %v48_v6  ;;  %396 = vmatprep.subr.bf16.mxu0 %v395_v4  ;;  %v401_v12 = vpack.c.bf16 %v52_v11, %v47_v10  ;;  %v49_v13 = vld [vmem:[#allocation5 + $0x20] sm:$0xff]  ;;  %v54_v14 = vld [vmem:[#allocation5 + $0x48] sm:$0xff]  ;;  %v44_v15 = vld [vmem:[#allocation2] sm:$0xff]  ;;  %s481_s15 = scalar_lea.vmem %s368_s14, 640  ;;  %p486_p3 = scmp.lt.s32.totalorder %s368_s14, %s368_s14 }
  0x2b   :  { %398 = vmatpush1.bf16.msra.mxu0 %v397_v8  ;;  %v404_v16 = vpack.c.bf16 %v54_v14, %v49_v13  ;;  %p482_p2 = scmp.ne.s32.totalorder %s368_s14, %s481_s15  ;;  %p487_p4 = scmp.lt.s32.totalorder %s481_s15, %s481_s15 }
  0x2c   :  { %400 = vmatprep.subr.bf16.mxu1 %v399_v9  ;;  %403 = vmatprep.subr.bf16.mxu0 %v538_v17 }
  0x2d   :  { %402 = vmatpush1.bf16.msra.mxu1 %v401_v12  ;;  %p488_p5 = por %p487_p4, %p486_p3 }
  0x2e   :  { %381 = vmatmul.mubr.msk.f32.vlgmr.msra.gmra.mrb[0].mxu0 %vm55_vm0, %v44_v15 }
  0x2f   :  { %405 = vmatpush3.bf16.msra.mxu0 %v404_v16  ;;  %392 = vmatprep.mubr.msk.f32.mxu0 %vm539_vm1, %v537_v0  ;;  %p489_p6 = pnand %p488_p5, %p482_p2 }
  0x30   :  { %382 = vmatmul.mubr.msk.f32.vlgmr.msra.gmra.mrb[0].mxu1 %vm55_vm0, %v44_v15 }
  0x32   :  { %393 = vmatmul.mubr.msk.f32.vlgmr.msra.gmra.mrb[2].mxu0 %vm55_vm0, %v44_v15 }
 0x101   :  { %v125_v18 = vpop.f32.mrb[0].mxu0 }
 0x102   :  { %271 = vst [vmem:[#allocation8] sm:$0xff] %v125_v18  ;;  %v281_v19 = vmin.f32 %v125_v18, 1.0  ;;  %v127_v20 = vpop.f32.mrb[1].mxu0 }
 0x103   :  { %v196_v21 = vpop.f32.mrb[0].mxu1  ;;  %272 = vst [vmem:[#allocation8 + $0x8] sm:$0xff] %v127_v20  ;;  %v282_v22 = vmin.f32 %v127_v20, 1.0 }
 0x104   :  { %273 = vst [vmem:[#allocation8 + $0x10] sm:$0xff] %v196_v21  ;;  %v283_v23 = vmin.f32 %v196_v21, 1.0  ;;  %v198_v24 = vpop.f32.mrb[1].mxu1  ;;  %v286_v26 = vadd.f32 1e-05, %v281_v19 }
 0x105   :  { %274 = vst [vmem:[#allocation8 + $0x18] sm:$0xff] %v198_v24  ;;  %v284_v27 = vmin.f32 %v198_v24, 1.0  ;;  %v287_v28 = vadd.f32 1e-05, %v282_v22  ;;  %v267_v30 = vpop.f32.mrb[2].mxu0 }
 0x106   :  { %v288_v29 = vadd.f32 1e-05, %v283_v23  ;;  %415 = vlog2.f32 %v286_v26  ;;  %275 = vst [vmem:[#allocation8 + $0x20] sm:$0xff] %v267_v30  ;;  %v394_v31 = vpop.f32.mrb[3].mxu0  ;;  %v285_v32 = vmin.f32 %v267_v30, 1.0 }
 0x107   :  { %v289_v33 = vadd.f32 1e-05, %v284_v27  ;;  %417 = vlog2.f32 %v287_v28 }
 0x108   :  { %492 = shalt.err (!%p489_p6)
}
 0x109   :  { %s493_s18 = scalar_lea.hbm %s629_s4, 640 }
 0x10a   :  { %p494_p7 = scmp.ne.s32.totalorder %s629_s4, %s493_s18  ;;  %p497_p8 = scmp.lt.u32.totalorder %s493_s18, %s629_s4 }
 0x10c   :  { %p499_p9 = pnand %p497_p8, %p494_p7 }
 0x10e   :  { %502 = shalt.err (!%p499_p9)
}
 0x10f   :  { %370 = dma.vmem_to_hbm [thread:$0]  %s368_s14, 640, %s629_s4, [#allocation9]   ;;  %419 = vlog2.f32 %v288_v29  ;;  %v290_v35 = vadd.f32 1e-05, %v285_v32  ;;  %v305_v36 = vsub.s32 0, %v304_v34  ;;  %v309_v38 = vsub.s32 1, %v304_v34 }
 0x110   :  { %421 = vlog2.f32 %v289_v33  ;;  %v291_v37 = vld [vmem:[%s627_s2] sm:$0x1f]  ;;  %v313_v39 = vsub.s32 2, %v304_v34  ;;  %v317_v40 = vsub.s32 3, %v304_v34  ;;  %v321_v42 = vsub.s32 4, %v304_v34  ;;  %v416_v43 = vpop.eup %415  ;;  %s541_s2 = smov [#allocation7]  }
 0x111   :  { %423 = vlog2.f32 %v290_v35  ;;  %v306_v41 = vrot.slane %v291_v37, %v305_v36  ;;  %v310_v44 = vrot.slane %v291_v37, %v309_v38  ;;  %v418_v45 = vpop.eup %417  ;;  %v293_v46 = vmul.f32 0.6931472, %v416_v43  ;;  %s357_s4 = sshll.u32 %s541_s2, 4  ;;  %s358_s4 = int_to_ptr.vmem [resolvable:$true] %s357_s4 }
 0x112   :  { %v314_v47 = vrot.slane %v291_v37, %v313_v39  ;;  %v295_v49 = vmul.f32 0.6931472, %v418_v45  ;;  %v318_v50 = vrot.slane %v291_v37, %v317_v40  ;;  %v322_v53 = vrot.slane %v291_v37, %v321_v42  ;;  %s503_s27 = scalar_lea.vmem %s358_s4, 128  ;;  %p508_p11 = scmp.lt.s32.totalorder %s358_s4, %s358_s4 }
 0x113   :  { %v328_v54 = vmul.f32 %v306_v41, %v293_v46  ;;  %p504_p10 = scmp.ne.s32.totalorder %s358_s4, %s503_s27  ;;  %p509_p12 = scmp.lt.s32.totalorder %s503_s27, %s503_s27 }
 0x114   :  { %v329_v57 = vmul.f32 %v310_v44, %v295_v49 }
 0x115   :  { %v333_v60 = vmul.f32 1.442695, %v328_v54  ;;  %p510_p13 = por %p509_p12, %p508_p11 }
 0x116   :  { %v335_v62 = vmul.f32 1.442695, %v329_v57 }
 0x117   :  { %425 = vpow2.f32 %v333_v60  ;;  %p511_p0 = pnand %p510_p13, %p504_p10 }
 0x118   :  { %427 = vpow2.f32 %v335_v62 }
 0x119   :  { %v420_v48 = vpop.eup %419 }
 0x11a   :  { %v422_v51 = vpop.eup %421  ;;  %v297_v52 = vmul.f32 0.6931472, %v420_v48 }
 0x11b   :  { %v424_v55 = vpop.eup %423  ;;  %v299_v56 = vmul.f32 0.6931472, %v422_v51 }
 0x11c   :  { %v301_v58 = vmul.f32 0.6931472, %v424_v55  ;;  %v330_v59 = vmul.f32 %v314_v47, %v297_v52 }
 0x11d   :  { %v331_v61 = vmul.f32 %v318_v50, %v299_v56 }
 0x11e   :  { %v332_v63 = vmul.f32 %v322_v53, %v301_v58  ;;  %v337_v0 = vmul.f32 1.442695, %v330_v59 }
 0x11f   :  { %v339_v1 = vmul.f32 1.442695, %v331_v61 }
 0x120   :  { %429 = vpow2.f32 %v337_v0  ;;  %v341_v2 = vmul.f32 1.442695, %v332_v63 }
 0x121   :  { %431 = vpow2.f32 %v339_v1  ;;  %v426_v3 = vpop.eup %425 }
 0x122   :  { %433 = vpow2.f32 %v341_v2  ;;  %v428_v4 = vpop.eup %427 }
 0x123   :  { %v343_v6 = vadd.f32 %v428_v4, %v426_v3 }
 0x12a   :  { %v430_v5 = vpop.eup %429 }
 0x12b   :  { %v432_v7 = vpop.eup %431  ;;  %v344_v8 = vadd.f32 %v430_v5, %v343_v6 }
 0x12c   :  { %v434_v9 = vpop.eup %433 }
 0x12d   :  { %v345_v10 = vadd.f32 %v432_v7, %v344_v8 }
 0x12f   :  { %v346_v11 = vadd.f32 %v434_v9, %v345_v10 }
 0x131   :  { %v384_v12 = vadd.f32 -4.0, %v346_v11 }
 0x133   :  { %435 = vrcp.f32 %v384_v12 }
 0x13d   :  { %v436_v13 = vpop.eup %435 }
 0x13e   :  { %350 = vst [vmem:[#allocation7] sm:$0xff] %v436_v13 }
 0x13f   :  { %514 = shalt.err (!%p511_p0)
}
 0x140   :  { %s515_s30 = scalar_lea.hbm %s628_s3, 128 }
 0x141   :  { %p516_p1 = scmp.ne.s32.totalorder %s628_s3, %s515_s30  ;;  %p519_p2 = scmp.lt.u32.totalorder %s515_s30, %s628_s3 }
 0x143   :  { %p521_p3 = pnand %p519_p2, %p516_p1 }
 0x145   :  { %524 = shalt.err (!%p521_p3)
}
 0x146   :  { %360 = dma.vmem_to_hbm [thread:$0]  %s358_s4, 128, %s628_s3, [#allocation4]  }
 0x147   :  { %529 = dma.done.wait [#allocation4], 128  }
 0x148   :  { %530 = vsyncadd [#allocation4], 4294967168 }
 0x149   :  { %531 = dma.done.wait [#allocation9], 640  }
 0x14a   :  { %532 = vsyncadd [#allocation9], 4294966656 }
 0x14b   :  { %377 = vsyncpa [#allocation3], 1 }
 0x14c   :  { %378 = vsyncpa [#allocation6], 1 }
 0x14d   :  { %379 = vsyncpa [#allocation4], 1 }
 0x14e   :  { %380 = vsyncpa [#allocation9], 1 }

</bundles_post_ra>
